<compile_context>
chip_gen: v5e
topology: v5e:2x2
jax: 0.10.0
libtpu: 0.0.40
codegen_flags: <defaults>
</compile_context>

<pallas_src>
import functools
import math

import jax
import jax.numpy as jnp
from jax.experimental import pallas as pl
from jax.experimental.pallas import tpu as pltpu

LANES = 128
SUBLANES = 8
MAX_BLOCK_ROWS = 2048   # generic path: (2048, 128) f32 = 1 MiB / input / step
CPM_MAX_ROWS = 1024     # cpm path: pred block (6, 1024, 128) f32 = 3 MiB / step


# ---------------------------------------------------------------------------
# Generic path: sum(((pred - gt) * w) ** 2) over a flattened (rows, 128) slab.
# ---------------------------------------------------------------------------
def _partial_sq_sum_kernel(p_ref, g_ref, w_ref, out_ref, *, valid_rows, block_rows):
    p = p_ref[...].astype(jnp.float32)
    g = g_ref[...].astype(jnp.float32)
    w = w_ref[...].astype(jnp.float32)
    d = (p - g) * w
    dd = d * d
    if valid_rows % block_rows != 0:
        # Tail block extends past the slab; mask the out-of-bounds rows.
        row_ids = (pl.program_id(0) * block_rows
                   + jax.lax.broadcasted_iota(jnp.int32, (block_rows, LANES), 0))
        dd = jnp.where(row_ids < valid_rows, dd, 0.0)
    # Sublane-aligned partial reduction (pure VPU adds).  The single expensive
    # cross-lane/sublane reduce happens once, in the wrapper.
    out_ref[0] = dd.reshape(block_rows // SUBLANES, SUBLANES, LANES).sum(axis=0)


@jax.jit
def _masked_sq_sum(pred, gt, w):
    n = pred.size
    rows = pl.cdiv(n, LANES)
    rows8 = pl.cdiv(rows, SUBLANES) * SUBLANES
    padded = rows8 * LANES

    def slab(x):
        flat = x.reshape(-1)             # free (contiguous), keeps native dtype
        if padded != n:                  # tail pad only when actually required
            flat = jnp.pad(flat, (0, padded - n))
        return flat.reshape(rows8, LANES)

    p2, g2, w2 = slab(pred), slab(gt), slab(w)

    block_rows = min(MAX_BLOCK_ROWS, rows8)   # multiple of 8, or the full extent
    n_blocks = pl.cdiv(rows8, block_rows)

    in_spec = pl.BlockSpec((block_rows, LANES), lambda i: (i, 0))
    out_spec = pl.BlockSpec((1, SUBLANES, LANES), lambda i: (i, 0, 0))

    partials = pl.pallas_call(
        functools.partial(_partial_sq_sum_kernel,
                          valid_rows=rows8, block_rows=block_rows),
        out_shape=jax.ShapeDtypeStruct((n_blocks, SUBLANES, LANES), jnp.float32),
        grid_spec=pltpu.PrefetchScalarGridSpec(
            num_scalar_prefetch=0,
            grid=(n_blocks,),
            in_specs=[in_spec, in_spec, in_spec],
            out_specs=out_spec,
        ),
        compiler_params=pltpu.CompilerParams(
            dimension_semantics=("parallel",)),
    )(p2, g2, w2)
    return jnp.sum(partials)


# ---------------------------------------------------------------------------
# 'cpm' path: pred is (B, S, *spatial); gt / w are (B, *spatial), broadcast
# over the stage axis inside the kernel (no 6x stack materialisation).
# ---------------------------------------------------------------------------
def _cpm_partial_kernel(p_ref, g_ref, w_ref, out_ref, *, m_rows, tm):
    p = p_ref[0].astype(jnp.float32)        # (stages, tm, 128)
    g = g_ref[0].astype(jnp.float32)        # (tm, 128)
    w = w_ref[0].astype(jnp.float32)        # (tm, 128)
    d = p - g[None, :, :]                   # broadcast over the stage axis
    sq = jnp.sum(d * d, axis=0)             # (tm, 128)
    contrib = sq * (w * w)
    if m_rows % tm != 0:
        row_ids = (pl.program_id(1) * tm
                   + jax.lax.broadcasted_iota(jnp.int32, (tm, LANES), 0))
        contrib = jnp.where(row_ids < m_rows, contrib, 0.0)
    rem = tm % SUBLANES
    if rem:
        contrib = jnp.concatenate(
            [contrib, jnp.zeros((SUBLANES - rem, LANES), jnp.float32)], axis=0)
    out_ref[0, 0] = contrib.reshape(-1, SUBLANES, LANES).sum(axis=0)


@jax.jit
def _masked_sq_sum_cpm(pred, gt, w):
    b, n_stage = pred.shape[0], pred.shape[1]
    chw = math.prod(gt.shape[1:])
    if chw % LANES != 0:
        # Rare non-lane-aligned spatial size: fall back to materialised broadcast.
        gt_b = jnp.broadcast_to(jnp.expand_dims(gt, 1), pred.shape)
        w_b = jnp.broadcast_to(jnp.expand_dims(w, 1), pred.shape)
        return _masked_sq_sum(pred, gt_b, w_b)

    m_rows = chw // LANES
    tm = min(CPM_MAX_ROWS, m_rows)          # multiple of 8, or the full extent
    n_m = pl.cdiv(m_rows, tm)

    p4 = pred.reshape(b, n_stage, m_rows, LANES)   # free (contiguous)
    g3 = gt.reshape(b, m_rows, LANES)
    w3 = w.reshape(b, m_rows, LANES)

    partials = pl.pallas_call(
        functools.partial(_cpm_partial_kernel, m_rows=m_rows, tm=tm),
        out_shape=jax.ShapeDtypeStruct((b, n_m, SUBLANES, LANES), jnp.float32),
        grid_spec=pltpu.PrefetchScalarGridSpec(
            num_scalar_prefetch=0,
            grid=(b, n_m),
            in_specs=[
                pl.BlockSpec((1, n_stage, tm, LANES), lambda bi, mi: (bi, 0, mi, 0)),
                pl.BlockSpec((1, tm, LANES), lambda bi, mi: (bi, mi, 0)),
                pl.BlockSpec((1, tm, LANES), lambda bi, mi: (bi, mi, 0)),
            ],
            out_specs=pl.BlockSpec((1, 1, SUBLANES, LANES),
                                   lambda bi, mi: (bi, mi, 0, 0)),
        ),
        compiler_params=pltpu.CompilerParams(
            dimension_semantics=("parallel", "parallel")),
    )(p4, g3, w3)
    return jnp.sum(partials)


class MSELossPallas:
    """JAX/Pallas port of the PyTorch MSELoss module."""

    def __init__(self, heatmap2coord):
        self.heatmap2coord = heatmap2coord

    def __call__(self, output, labels):
        pred = output
        if self.heatmap2coord == 'heatmap':
            gt = labels['target_hm']
            w = labels['target_hm_weight']
            total = _masked_sq_sum(pred, gt, w)
        elif self.heatmap2coord == 'coord':
            gt = labels['target_uv'].reshape(pred.shape)
            w = labels['target_uv_weight'].reshape(pred.shape)
            total = _masked_sq_sum(pred, gt, w)
        elif self.heatmap2coord == 'cpm':
            gt = labels['target_hm']
            w = labels['target_hm_weight']
            total = _masked_sq_sum_cpm(pred, gt, w)
        else:
            raise ValueError(f"unknown heatmap2coord: {self.heatmap2coord}")
        # nn.MSELoss(reduction='mean') over all pred elements; module scales by 0.5.
        return 0.5 * total / jnp.float32(pred.size)


if __name__ == "__main__":
    key = jax.random.PRNGKey(0)
    k1, k2, k3, k4, k5 = jax.random.split(key, 5)

    B, C, H, W = 2, 4, 16, 16  # small NCHW-shaped heatmaps

    # ----- 'heatmap' mode -----
    pred_hm = jax.random.normal(k1, (B, C, H, W), dtype=jnp.float32)
    target_hm = jax.random.normal(k2, (B, C, H, W), dtype=jnp.float32)
    target_hm_w = (jax.random.uniform(k3, (B, C, H, W)) > 0.5).astype(jnp.float32)
    labels_hm = {'target_hm': target_hm, 'target_hm_weight': target_hm_w}

    loss_hm = MSELossPallas('heatmap')(pred_hm, labels_hm)
    ref_hm = 0.5 * jnp.mean((pred_hm * target_hm_w - target_hm * target_hm_w) ** 2)

    # ----- 'coord' mode -----
    K = C * 2
    pred_uv = jax.random.normal(k4, (B, K), dtype=jnp.float32)
    target_uv = jax.random.normal(k5, (B, K), dtype=jnp.float32)
    target_uv_w = jnp.ones((B, K), dtype=jnp.float32)
    labels_uv = {'target_uv': target_uv, 'target_uv_weight': target_uv_w}

    loss_uv = MSELossPallas('coord')(pred_uv, labels_uv)
    ref_uv = 0.5 * jnp.mean((pred_uv * target_uv_w - target_uv * target_uv_w) ** 2)

    # ----- 'cpm' mode -----
    pred_cpm = jnp.stack([pred_hm] * 6, axis=1)  # (B, 6, C, H, W)
    loss_cpm = MSELossPallas('cpm')(pred_cpm, labels_hm)
    gt_cpm = jnp.stack([target_hm] * 6, axis=1)
    w_cpm = jnp.stack([target_hm_w] * 6, axis=1)
    ref_cpm = 0.5 * jnp.mean((pred_cpm * w_cpm - gt_cpm * w_cpm) ** 2)

    results = jax.block_until_ready((loss_hm, loss_uv, loss_cpm))

    assert jnp.allclose(results[0], ref_hm, rtol=1e-5, atol=1e-6), (results[0], ref_hm)
    assert jnp.allclose(results[1], ref_uv, rtol=1e-5, atol=1e-6), (results[1], ref_uv)
    assert jnp.allclose(results[2], ref_cpm, rtol=1e-5, atol=1e-6), (results[2], ref_cpm)

    print("KERNEL_OK")
</pallas_src>

<mosaic_0001>
module attributes {stable_mosaic.version = 11 : i64} {
  func.func @_partial_sq_sum_kernel(%arg0: i32, %arg1: memref<16x128xf32, #tpu.memory_space<vmem>>, %arg2: memref<16x128xf32, #tpu.memory_space<vmem>>, %arg3: memref<16x128xf32, #tpu.memory_space<vmem>>, %arg4: memref<1x8x128xf32, #tpu.memory_space<vmem>>) attributes {dimension_semantics = [#tpu.dimension_semantics<parallel>], iteration_bounds = array<i64: 1>, scalar_prefetch = 0 : i64, scratch_operands = 0 : i64, tpu.core_type = #tpu.core_type<tc>, window_params = [{transform_indices = @transform_0, window_bounds = array<i64: 16, 128>}, {transform_indices = @transform_1, window_bounds = array<i64: 16, 128>}, {transform_indices = @transform_2, window_bounds = array<i64: 16, 128>}, {transform_indices = @transform_3, window_bounds = array<i64: 1, 8, 128>}]} {
    %c0 = arith.constant 0 : index
    %c0_0 = arith.constant 0 : index
    %0 = vector.load %arg1[%c0, %c0_0] : memref<16x128xf32, #tpu.memory_space<vmem>>, vector<16x128xf32>
    %c0_1 = arith.constant 0 : index
    %c0_2 = arith.constant 0 : index
    %1 = vector.load %arg2[%c0_1, %c0_2] : memref<16x128xf32, #tpu.memory_space<vmem>>, vector<16x128xf32>
    %c0_3 = arith.constant 0 : index
    %c0_4 = arith.constant 0 : index
    %2 = vector.load %arg3[%c0_3, %c0_4] : memref<16x128xf32, #tpu.memory_space<vmem>>, vector<16x128xf32>
    %3 = arith.subf %0, %1 : vector<16x128xf32>
    %4 = arith.mulf %3, %2 : vector<16x128xf32>
    %5 = arith.mulf %4, %4 : vector<16x128xf32>
    %6 = vector.shape_cast %5 : vector<16x128xf32> to vector<2x8x128xf32>
    %cst = arith.constant dense<0.000000e+00> : vector<8x128xf32>
    %7 = vector.multi_reduction <add>, %6, %cst [0] : vector<2x8x128xf32> to vector<8x128xf32>
    %c0_5 = arith.constant 0 : index
    %c0_6 = arith.constant 0 : index
    %c0_7 = arith.constant 0 : index
    %8 = vector.load %arg4[%c0_5, %c0_6, %c0_7] : memref<1x8x128xf32, #tpu.memory_space<vmem>>, vector<1x8x128xf32>
    %9 = vector.shape_cast %8 : vector<1x8x128xf32> to vector<8x128xf32>
    %10 = vector.shape_cast %7 : vector<8x128xf32> to vector<1x8x128xf32>
    tpu.vector_store %arg4[%c0_5, %c0_6, %c0_7], %10 {strides = array<i32>} : memref<1x8x128xf32, #tpu.memory_space<vmem>>, vector<1x8x128xf32>,
    return
  }
  func.func @transform_0(%arg0: i32) -> (i32, i32) {
    %c0_i32 = arith.constant 0 : i32
    %c0_i32_0 = arith.constant 0 : i32
    return %arg0, %c0_i32 : i32, i32
  }
  func.func @transform_1(%arg0: i32) -> (i32, i32) {
    %c0_i32 = arith.constant 0 : i32
    %c0_i32_0 = arith.constant 0 : i32
    return %arg0, %c0_i32 : i32, i32
  }
  func.func @transform_2(%arg0: i32) -> (i32, i32) {
    %c0_i32 = arith.constant 0 : i32
    %c0_i32_0 = arith.constant 0 : i32
    return %arg0, %c0_i32 : i32, i32
  }
  func.func @transform_3(%arg0: i32) -> (i32, i32, i32) {
    %c0_i32 = arith.constant 0 : i32
    %c0_i32_0 = arith.constant 0 : i32
    %c0_i32_1 = arith.constant 0 : i32
    return %arg0, %c0_i32, %c0_i32_0 : i32, i32, i32
  }
}

</mosaic_0001>

<bundles_post_ra>
// kernel: _masked_sq_sum.1
= control target key start
LH: loop header
LB: loop body
LE: loop exit
PB: predicated region body
PF: predicated region fallthrough
CT: control target
= control target key end

     0   :  { %s73_s0 = inlined_call_operand.vmem [shape: f32[16,128], index: 0, kind: input, shape index: {}]   ;;  %s74_s1 = inlined_call_operand.vmem [shape: f32[16,128], index: 1, kind: input, shape index: {}]   ;;  %s75_s2 = inlined_call_operand.vmem [shape: f32[16,128], index: 2, kind: input, shape index: {}]   ;;  %s76_s3 = inlined_call_operand.vmem [shape: f32[1,8,128], index: 3, kind: output, shape index: {}]  }
   0x1   :  { %v14_v0 = vld [vmem:[%s73_s0] sm:$0xff]  ;;  %v15_v1 = vld [vmem:[%s73_s0 + $0x8] sm:$0xff] }
   0x2   :  { %v16_v2 = vld [vmem:[%s74_s1] sm:$0xff]  ;;  %v17_v3 = vld [vmem:[%s74_s1 + $0x8] sm:$0xff] }
   0x3   :  { %v18_v4 = vld [vmem:[%s75_s2] sm:$0xff]  ;;  %v19_v5 = vld [vmem:[%s75_s2 + $0x8] sm:$0xff]  ;;  %v20_v6 = vsub.f32 %v14_v0, %v16_v2  ;;  %v21_v7 = vsub.f32 %v15_v1, %v17_v3 }
   0x5   :  { %v22_v8 = vmul.f32 %v20_v6, %v18_v4  ;;  %v23_v9 = vmul.f32 %v21_v7, %v19_v5 }
   0x7   :  { %v24_v10 = vmul.f32 %v22_v8, %v22_v8  ;;  %v25_v11 = vmul.f32 %v23_v9, %v23_v9 }
   0x9   :  { %v26_v12 = vadd.f32 %v25_v11, %v24_v10 }
   0xb   :  { %27 = vst [vmem:[%s76_s3] sm:$0xff] %v26_v12 }

</bundles_post_ra>
